<compile_context>
chip_gen: v7x
topology: tpu7x:2x2x1
jax: 0.10.0
libtpu: 0.0.40
codegen_flags: <defaults>
</compile_context>

<pallas_src>
import functools
import math

import jax
import jax.numpy as jnp
from jax.experimental import pallas as pl
from jax.experimental.pallas import tpu as pltpu

_BN_EPS = 1e-5
_NEG_SLOPE = 0.01                     # F.leaky_relu default
_VMEM_LIMIT = 32 * 1024 * 1024        # safe on v5e/v6e and v7x
_VMEM_BUDGET = 24 * 1024 * 1024       # tile-chooser working-set budget
_MAX_TILE = 1024


def _round_up(x, m):
    return ((x + m - 1) // m) * m


def _pick_tile(n, per_row_bytes, resident_bytes,
               budget=_VMEM_BUDGET, cap=_MAX_TILE):
    """Largest row tile whose per-call VMEM working set fits the budget.

    Multi-tile sizes are multiples of 128 (lane-aligned (1, tile) index rows);
    a single tile covering all rows only needs sublane (8) alignment.
    """
    if n <= cap and resident_bytes + _round_up(n, 8) * per_row_bytes <= budget:
        return max(8, _round_up(n, 8))
    t = cap
    while t > 128 and resident_bytes + t * per_row_bytes > budget:
        t //= 2
    return t


def _whole(shape):
    zero = (0,) * len(shape)
    return pl.BlockSpec(shape, lambda i, _z=zero: _z)


# ----------------------------------------------------------------------------
# Pass 1: bn0-folded linear `a` (3 matmuls) -> bf16 c_pre + bn1 column stats
# ----------------------------------------------------------------------------
def _pass1_kernel(n_rows, n_pad, eh_ref, et_ref, r_ref,
                  wp_ref, wm_ref, w3_ref, bias_ref,
                  c_ref, sum_ref, sq_ref):
    i = pl.program_id(0)

    @pl.when(i == 0)
    def _init():
        sum_ref[...] = jnp.zeros_like(sum_ref)
        sq_ref[...] = jnp.zeros_like(sq_ref)

    eh = eh_ref[...]
    et = et_ref[...]
    r = r_ref[...]
    bias = bias_ref[...]

    # 3 matmuls instead of 5 (fwd/bwd symmetry).
    a = jnp.dot(eh + et, wp_ref[...], preferred_element_type=jnp.float32)
    b = jnp.dot(eh - et, wm_ref[...], preferred_element_type=jnp.float32)
    d = jnp.dot(r, w3_ref[...], preferred_element_type=jnp.float32)
    c_f = 0.5 * (a + b) + d + bias          # row of [e_h | e_t |  r]
    c_b = 0.5 * (a - b) - d + bias          # row of [e_t | e_h | -r]

    c_ref[0, :, :] = c_f.astype(jnp.bfloat16)
    c_ref[1, :, :] = c_b.astype(jnp.bfloat16)

    tile = eh.shape[0]
    if n_rows == n_pad:                     # static: no padded rows
        mf, mb = c_f, c_b
    else:                                   # mask padded rows out of BN stats
        rows = i * tile + jax.lax.broadcasted_iota(jnp.int32, (tile, 1), 0)
        valid = rows < n_rows
        mf = jnp.where(valid, c_f, 0.0)
        mb = jnp.where(valid, c_b, 0.0)

    sum_ref[...] += jnp.sum(mf + mb, axis=0, keepdims=True)
    sq_ref[...] += jnp.sum(mf * mf + mb * mb, axis=0, keepdims=True)


# ----------------------------------------------------------------------------
# Pass 2: bn1 + attention + merged bf16 one-hot scatter-adds
# ----------------------------------------------------------------------------
def _pass2_kernel(e_col, c_ref, scale_ref, shift_ref, w2_ref, b2_ref,
                  heads_ref, tails_ref, rels_ref,
                  ent_ids_ref, rel_ids_ref, col_ids_ref,
                  ent_ref, rel_ref):
    i = pl.program_id(0)

    @pl.when(i == 0)
    def _init():
        ent_ref[...] = jnp.zeros_like(ent_ref)
        rel_ref[...] = jnp.zeros_like(rel_ref)

    scale = scale_ref[...]
    shift = shift_ref[...]
    w2row = w2_ref[...]
    b2 = b2_ref[0, 0]
    is_e = col_ids_ref[...] == e_col          # (1, out_pad): spare e_b lane

    def edge_vals(c_raw):
        c = c_raw.astype(jnp.float32) * scale + shift          # bn1 affine
        s = jnp.sum(c * w2row, axis=-1, keepdims=True) + b2    # a_2 on the VPU
        e = jnp.exp(-jnp.where(s >= 0.0, s, _NEG_SLOPE * s))
        return e, e * c

    e_f, t1_f = edge_vals(c_ref[0])           # forward rows -> heads
    e_b, t1_b = edge_vals(c_ref[1])           # backward rows -> tails

    # Merged head/tail scatter: one bf16 one-hot matmul per tile (K = 2*tile).
    ent_vals = jnp.concatenate(
        [jnp.where(is_e, e_f, t1_f), jnp.where(is_e, e_b, t1_b)],
        axis=0).astype(jnp.bfloat16)                       # (2*tile, out_pad)
    ht_row = jnp.concatenate([heads_ref[...], tails_ref[...]], axis=1)
    oh_ht = (ent_ids_ref[...] == ht_row).astype(jnp.bfloat16)
    ent_ref[...] += jnp.dot(oh_ht, ent_vals,
                            preferred_element_type=jnp.float32)

    # Relation scatter (forward half only); exact counts ride in the spare lane.
    rel_vals = jnp.where(is_e, 1.0, t1_f).astype(jnp.bfloat16)
    oh_r = (rel_ids_ref[...] == rels_ref[...]).astype(jnp.bfloat16)
    rel_ref[...] += jnp.dot(oh_r, rel_vals,
                            preferred_element_type=jnp.float32)


# ----------------------------------------------------------------------------
# Wrapper
# ----------------------------------------------------------------------------
def _rot_att_pallas(e_h, e_t, r, heads, tails, rels, params,
                    n_entities, n_relations):
    n, in_dim = e_h.shape
    out_dim = params["w_a"].shape[1]
    f32 = jnp.float32

    in_pad = _round_up(in_dim, 128)
    out_pad = _round_up(out_dim + 1, 128)     # +1 lane for e_b / counts
    n_ent_pad = _round_up(n_entities, 8)
    n_rel_pad = _round_up(n_relations, 8)

    # ---- fold train-mode bn0 into the `a` weights (closed-form batch stats
    #      of the [e_h|e_t|r] / [e_t|e_h|-r] stack; h never materialized) ----
    two_n = 2.0 * n
    g0 = params["gamma0"][0]
    b0 = params["beta0"][0]
    m01 = (jnp.sum(e_h, 0) + jnp.sum(e_t, 0)) / two_n
    v01 = jnp.maximum(
        (jnp.sum(e_h * e_h, 0) + jnp.sum(e_t * e_t, 0)) / two_n - m01 * m01, 0.0)
    v2 = jnp.mean(r * r, axis=0)              # mean of the ±r stack is 0
    mean0 = jnp.concatenate([m01, m01, jnp.zeros_like(m01)])
    var0 = jnp.concatenate([v01, v01, v2])
    scale0 = g0 * jax.lax.rsqrt(var0 + _BN_EPS)
    shift0 = b0 - mean0 * scale0
    w_scaled = params["w_a"] * scale0[:, None]                        # (3F, D)
    bias_fold = (shift0 @ params["w_a"] + params["b_a"][0])[None, :]  # (1, D)
    w1s = w_scaled[:in_dim]
    w2s = w_scaled[in_dim:2 * in_dim]
    w3s = w_scaled[2 * in_dim:]

    def pad2(x, rows, cols):
        return jnp.pad(x, ((0, rows - x.shape[0]), (0, cols - x.shape[1])))

    wp = pad2(w1s + w2s, in_pad, out_pad)
    wm = pad2(w1s - w2s, in_pad, out_pad)
    w3p = pad2(w3s, in_pad, out_pad)
    bias_p = pad2(bias_fold, 1, out_pad)

    # ---- lane-pad gathers, pick a row tile against the VMEM budget ----
    e_h = pad2(e_h, n, in_pad)
    e_t = pad2(e_t, n, in_pad)
    r = pad2(r, n, in_pad)

    p1_row = 2 * (3 * in_pad * 4 + 2 * out_pad * 2) + 8 * out_pad * 4
    p1_res = 3 * in_pad * out_pad * 4 + 6 * out_pad * 4
    p2_row = (2 * (2 * out_pad * 2 + 3 * 4)
              + 2 * (2 * n_ent_pad + n_rel_pad) + 10 * out_pad * 4)
    p2_res = (n_ent_pad + n_rel_pad) * (out_pad * 4 + 4) + 4 * out_pad * 4
    tile = min(_pick_tile(n, p1_row, p1_res), _pick_tile(n, p2_row, p2_res))
    n_pad = _round_up(n, tile)
    n_tiles = n_pad // tile

    pad = n_pad - n
    if pad:  # padded triplets point out of range -> dropped by the one-hots
        zf = jnp.zeros((pad, in_pad), f32)
        e_h = jnp.concatenate([e_h, zf], 0)
        e_t = jnp.concatenate([e_t, zf], 0)
        r = jnp.concatenate([r, zf], 0)
        heads = jnp.concatenate([heads, jnp.full((pad,), n_ent_pad, jnp.int32)])
        tails = jnp.concatenate([tails, jnp.full((pad,), n_ent_pad, jnp.int32)])
        rels = jnp.concatenate([rels, jnp.full((pad,), n_rel_pad, jnp.int32)])
    heads = heads.reshape(1, n_pad)
    tails = tails.reshape(1, n_pad)
    rels = rels.reshape(1, n_pad)

    comp = pltpu.CompilerParams(dimension_semantics=("arbitrary",),
                                vmem_limit_bytes=_VMEM_LIMIT)
    row_spec = pl.BlockSpec((tile, in_pad), lambda i: (i, 0))
    c_spec = pl.BlockSpec((2, tile, out_pad), lambda i: (0, i, 0))
    idx_spec = pl.BlockSpec((1, tile), lambda i: (0, i))

    # -------- pass 1: folded-bn0 linear -> bf16 c_pre + bn1 column stats ----
    cost1 = pl.CostEstimate(
        flops=int(2 * 3 * n_pad * in_pad * out_pad),
        transcendentals=0,
        bytes_accessed=int(4 * 3 * n_pad * in_pad + 2 * 2 * n_pad * out_pad
                           + 4 * 3 * in_pad * out_pad + 4 * 5 * out_pad))
    c_pre, col_sum, col_sq = pl.pallas_call(
        functools.partial(_pass1_kernel, n, n_pad),
        grid=(n_tiles,),
        in_specs=[row_spec, row_spec, row_spec,
                  _whole((in_pad, out_pad)), _whole((in_pad, out_pad)),
                  _whole((in_pad, out_pad)), _whole((1, out_pad))],
        out_specs=(c_spec, _whole((1, out_pad)), _whole((1, out_pad))),
        out_shape=(jax.ShapeDtypeStruct((2, n_pad, out_pad), jnp.bfloat16),
                   jax.ShapeDtypeStruct((1, out_pad), f32),
                   jax.ShapeDtypeStruct((1, out_pad), f32)),
        compiler_params=comp,
        cost_estimate=cost1,
    )(e_h, e_t, r, wp, wm, w3p, bias_p)

    # bn1 train-mode affine (biased variance, like torch); dead lanes stay 0.
    g1 = pad2(params["gamma1"], 1, out_pad)
    b1 = pad2(params["beta1"], 1, out_pad)
    mean1 = col_sum / two_n
    var1 = jnp.maximum(col_sq / two_n - mean1 * mean1, 0.0)
    scale1 = g1 * jax.lax.rsqrt(var1 + _BN_EPS)
    shift1 = b1 - mean1 * scale1
    w2p = pad2(params["w_a2"].reshape(1, out_dim), 1, out_pad)
    b2 = params["b_a2"].reshape(1, 1)

    ent_ids = jnp.arange(n_ent_pad, dtype=jnp.int32).reshape(n_ent_pad, 1)
    rel_ids = jnp.arange(n_rel_pad, dtype=jnp.int32).reshape(n_rel_pad, 1)
    col_ids = jnp.arange(out_pad, dtype=jnp.int32).reshape(1, out_pad)

    # -------- pass 2: bn1 + attention + fused entity/relation scatters ------
    cost2 = pl.CostEstimate(
        flops=int(2 * n_pad * out_pad * (2 * n_ent_pad + n_rel_pad)
                  + 16 * n_pad * out_pad),
        transcendentals=int(2 * n_pad),
        bytes_accessed=int(2 * 2 * n_pad * out_pad + 4 * 3 * n_pad
                           + 4 * (n_ent_pad + n_rel_pad) * out_pad))
    ent_acc, rel_acc = pl.pallas_call(
        functools.partial(_pass2_kernel, out_dim),
        grid=(n_tiles,),
        in_specs=[c_spec,
                  _whole((1, out_pad)), _whole((1, out_pad)),
                  _whole((1, out_pad)), _whole((1, 1)),
                  idx_spec, idx_spec, idx_spec,
                  _whole((n_ent_pad, 1)), _whole((n_rel_pad, 1)),
                  _whole((1, out_pad))],
        out_specs=(_whole((n_ent_pad, out_pad)), _whole((n_rel_pad, out_pad))),
        out_shape=(jax.ShapeDtypeStruct((n_ent_pad, out_pad), f32),
                   jax.ShapeDtypeStruct((n_rel_pad, out_pad), f32)),
        compiler_params=comp,
        cost_estimate=cost2,
    )(c_pre, scale1, shift1, w2p, b2, heads, tails, rels,
      ent_ids, rel_ids, col_ids)

    hs = ent_acc[:n_entities, :out_dim]
    ebs = ent_acc[:n_entities, out_dim:out_dim + 1]
    ebs = jnp.where(ebs == 0.0, 1e-12, ebs)
    h_ent = hs / ebs

    rel_sum = rel_acc[:n_relations, :out_dim]
    rel_cnt = rel_acc[:n_relations, out_dim:out_dim + 1]
    h_rel = rel_sum / jnp.maximum(rel_cnt, 1.0)
    return h_ent, h_rel


def _embedding_renorm(w, max_norm=1.0, norm_type=2.0):
    # Mirrors nn.Embedding(max_norm=1, norm_type=2) renorm of accessed rows
    # (forward-output equivalent; the in-place table side effect is not kept).
    norms = jnp.linalg.norm(w, ord=norm_type, axis=1, keepdims=True)
    scale = jnp.where(norms > max_norm, max_norm / (norms + 1e-7), 1.0)
    return w * scale


@functools.partial(jax.jit, static_argnames=("n_entities", "n_relations"))
def rot_att_forward(triplets, params, *, n_entities, n_relations):
    ent = _embedding_renorm(params["ent_embed"])
    rel = _embedding_renorm(params["rel_embed"])
    heads = triplets[:, 0].astype(jnp.int32)
    tails = triplets[:, 1].astype(jnp.int32)
    rids = triplets[:, 2].astype(jnp.int32)
    e_h = ent[heads]
    e_t = ent[tails]
    r = rel[rids]
    # TODO(synk): nn.Dropout(0.5) after bn0 is stochastic in train mode;
    # implemented as identity (eval semantics) to stay deterministic.
    return _rot_att_pallas(e_h, e_t, r, heads, tails, rids, params,
                           n_entities, n_relations)


# ----------------------------------------------------------------------------
# Pure-JAX reference (same semantics; used only as a sanity check)
# ----------------------------------------------------------------------------
def _reference_forward(triplets, params, n_entities, n_relations):
    ent = _embedding_renorm(params["ent_embed"])
    rel = _embedding_renorm(params["rel_embed"])
    heads = triplets[:, 0].astype(jnp.int32)
    tails = triplets[:, 1].astype(jnp.int32)
    rids = triplets[:, 2].astype(jnp.int32)
    e_h, e_t, r = ent[heads], ent[tails], rel[rids]
    h = jnp.concatenate([jnp.concatenate([e_h, e_t, r], 1),
                         jnp.concatenate([e_t, e_h, -r], 1)], 0)

    def bn(x, gamma, beta):
        m = jnp.mean(x, 0)
        v = jnp.var(x, 0)
        return gamma[0] * (x - m) * jax.lax.rsqrt(v + _BN_EPS) + beta[0]

    h = bn(h, params["gamma0"], params["beta0"])        # dropout = identity
    c = bn(h @ params["w_a"] + params["b_a"][0],
           params["gamma1"], params["beta1"])
    s = c @ params["w_a2"] + params["b_a2"][0]
    e_b = jnp.exp(-jnp.where(s >= 0.0, s, _NEG_SLOPE * s))
    t1 = e_b * c
    n = heads.shape[0]
    out_dim = c.shape[1]
    seg = jnp.concatenate([heads, tails])
    ebs = jnp.zeros((n_entities, 1), jnp.float32).at[seg].add(e_b)
    hs = jnp.zeros((n_entities, out_dim), jnp.float32).at[seg].add(t1)
    ebs = jnp.where(ebs == 0.0, 1e-12, ebs)
    h_ent = hs / ebs
    rel_sum = jnp.zeros((n_relations, out_dim), jnp.float32).at[rids].add(t1[:n])
    rel_cnt = jnp.zeros((n_relations, 1), jnp.float32).at[rids].add(1.0)
    h_rel = rel_sum / jnp.maximum(rel_cnt, 1.0)
    return h_ent, h_rel


# ----------------------------------------------------------------------------
# Deterministic parameter init (matches shapes in RotAttLayer.__init__)
# ----------------------------------------------------------------------------
def init_params(key, n_entities, n_relations, in_dim, out_dim,
                margin=6.0, epsilon=2.0):
    k = jax.random.split(key, 6)
    gain = 1.414
    f_in_a, f_out_a = 3 * in_dim, out_dim
    std_a = gain * math.sqrt(2.0 / (f_in_a + f_out_a))
    std_a2 = gain * math.sqrt(2.0 / (out_dim + 1))
    bnd_a = 1.0 / math.sqrt(f_in_a)
    bnd_a2 = 1.0 / math.sqrt(out_dim)
    emb_range = (margin + epsilon) / out_dim

    return {
        # Linear `a`: torch weight (out, 3*in) stored transposed as (3*in, out)
        "w_a": std_a * jax.random.normal(k[0], (3 * in_dim, out_dim), jnp.float32),
        "b_a": jax.random.uniform(k[1], (1, out_dim), jnp.float32, -bnd_a, bnd_a),
        "w_a2": std_a2 * jax.random.normal(k[2], (out_dim, 1), jnp.float32),
        "b_a2": jax.random.uniform(k[3], (1, 1), jnp.float32, -bnd_a2, bnd_a2),
        "ent_embed": jax.random.uniform(
            k[4], (n_entities, in_dim), jnp.float32, -emb_range, emb_range),
        "rel_embed": jax.random.uniform(
            k[5], (n_relations, in_dim), jnp.float32, -emb_range, emb_range),
        # BatchNorm affine params (default init: gamma=1, beta=0)
        "gamma0": jnp.ones((1, 3 * in_dim), jnp.float32),
        "beta0": jnp.zeros((1, 3 * in_dim), jnp.float32),
        "gamma1": jnp.ones((1, out_dim), jnp.float32),
        "beta1": jnp.zeros((1, out_dim), jnp.float32),
    }


if __name__ == "__main__":
    n_entities, n_relations = 12, 5
    in_dim, out_dim = 32, 32
    n_trip = 8

    key = jax.random.PRNGKey(0)
    kp, kh, kt, kr = jax.random.split(key, 4)
    params = init_params(kp, n_entities, n_relations, in_dim, out_dim)

    heads = jax.random.randint(kh, (n_trip,), 0, n_entities, dtype=jnp.int32)
    tails = jax.random.randint(kt, (n_trip,), 0, n_entities, dtype=jnp.int32)
    rels = jax.random.randint(kr, (n_trip,), 0, n_relations, dtype=jnp.int32)
    triplets = jnp.stack([heads, tails, rels], axis=1)        # (n, 3) int32

    h_ent, h_rel = rot_att_forward(
        triplets, params, n_entities=n_entities, n_relations=n_relations)
    jax.block_until_ready((h_ent, h_rel))

    assert h_ent.shape == (n_entities, out_dim)
    assert h_rel.shape == (n_relations, out_dim)
    assert bool(jnp.all(jnp.isfinite(h_ent))) and bool(jnp.all(jnp.isfinite(h_rel)))

    # Sanity-check against the pure-JAX reference (bf16 c_pre / bf16 scatter
    # values introduce ~1% rounding; loose tolerances catch structural bugs).
    ref_ent, ref_rel = _reference_forward(triplets, params,
                                          n_entities, n_relations)
    assert bool(jnp.allclose(h_ent, ref_ent, rtol=0.1, atol=0.1))
    assert bool(jnp.allclose(h_rel, ref_rel, rtol=0.1, atol=0.1))

    print("KERNEL_OK")
</pallas_src>

<mosaic_0001>
module attributes {stable_mosaic.version = 11 : i64} {
  func.func @_pass1_kernel(%arg0: i32, %arg1: memref<8x128xf32, #tpu.memory_space<vmem>>, %arg2: memref<8x128xf32, #tpu.memory_space<vmem>>, %arg3: memref<8x128xf32, #tpu.memory_space<vmem>>, %arg4: memref<128x128xf32, #tpu.memory_space<vmem>>, %arg5: memref<128x128xf32, #tpu.memory_space<vmem>>, %arg6: memref<128x128xf32, #tpu.memory_space<vmem>>, %arg7: memref<1x128xf32, #tpu.memory_space<vmem>>, %arg8: memref<2x8x128xbf16, #tpu.memory_space<vmem>>, %arg9: memref<1x128xf32, #tpu.memory_space<vmem>>, %arg10: memref<1x128xf32, #tpu.memory_space<vmem>>) attributes {dimension_semantics = [#tpu.dimension_semantics<arbitrary>], iteration_bounds = array<i64: 1>, scalar_prefetch = 0 : i64, scratch_operands = 0 : i64, tpu.core_type = #tpu.core_type<tc>, window_params = [{transform_indices = @transform_0, window_bounds = array<i64: 8, 128>}, {transform_indices = @transform_1, window_bounds = array<i64: 8, 128>}, {transform_indices = @transform_2, window_bounds = array<i64: 8, 128>}, {pipeline_mode = #tpu.pipeline_mode<synchronous>, transform_indices = @transform_3, window_bounds = array<i64: 128, 128>}, {pipeline_mode = #tpu.pipeline_mode<synchronous>, transform_indices = @transform_4, window_bounds = array<i64: 128, 128>}, {pipeline_mode = #tpu.pipeline_mode<synchronous>, transform_indices = @transform_5, window_bounds = array<i64: 128, 128>}, {pipeline_mode = #tpu.pipeline_mode<synchronous>, transform_indices = @transform_6, window_bounds = array<i64: 1, 128>}, {transform_indices = @transform_7, window_bounds = array<i64: 2, 8, 128>}, {pipeline_mode = #tpu.pipeline_mode<synchronous>, transform_indices = @transform_8, window_bounds = array<i64: 1, 128>}, {pipeline_mode = #tpu.pipeline_mode<synchronous>, transform_indices = @transform_9, window_bounds = array<i64: 1, 128>}]} {
    %c0_i32 = arith.constant 0 : i32
    %0 = arith.cmpi eq, %arg0, %c0_i32 : i32
    %1 = arith.extui %0 : i1 to i32
    %c0_i32_0 = arith.constant 0 : i32
    %2 = arith.cmpi ne, %1, %c0_i32_0 : i32
    scf.if %2 {
      %cst_33 = arith.constant 0.000000e+00 : f32
      %49 = vector.broadcast %cst_33 : f32 to vector<1x128xf32>
      %c0_34 = arith.constant 0 : index
      %c0_35 = arith.constant 0 : index
      %50 = vector.load %arg9[%c0_34, %c0_35] : memref<1x128xf32, #tpu.memory_space<vmem>>, vector<1x128xf32>
      tpu.vector_store %arg9[%c0_34, %c0_35], %49 {strides = array<i32>} : memref<1x128xf32, #tpu.memory_space<vmem>>, vector<1x128xf32>,
      %cst_36 = arith.constant 0.000000e+00 : f32
      %51 = vector.broadcast %cst_36 : f32 to vector<1x128xf32>
      %c0_37 = arith.constant 0 : index
      %c0_38 = arith.constant 0 : index
      %52 = vector.load %arg10[%c0_37, %c0_38] : memref<1x128xf32, #tpu.memory_space<vmem>>, vector<1x128xf32>
      tpu.vector_store %arg10[%c0_37, %c0_38], %51 {strides = array<i32>} : memref<1x128xf32, #tpu.memory_space<vmem>>, vector<1x128xf32>,
    } else {
    }
    %c0 = arith.constant 0 : index
    %c0_1 = arith.constant 0 : index
    %3 = vector.load %arg1[%c0, %c0_1] : memref<8x128xf32, #tpu.memory_space<vmem>>, vector<8x128xf32>
    %c0_2 = arith.constant 0 : index
    %c0_3 = arith.constant 0 : index
    %4 = vector.load %arg2[%c0_2, %c0_3] : memref<8x128xf32, #tpu.memory_space<vmem>>, vector<8x128xf32>
    %c0_4 = arith.constant 0 : index
    %c0_5 = arith.constant 0 : index
    %5 = vector.load %arg3[%c0_4, %c0_5] : memref<8x128xf32, #tpu.memory_space<vmem>>, vector<8x128xf32>
    %c0_6 = arith.constant 0 : index
    %c0_7 = arith.constant 0 : index
    %6 = vector.load %arg7[%c0_6, %c0_7] : memref<1x128xf32, #tpu.memory_space<vmem>>, vector<1x128xf32>
    %7 = arith.addf %3, %4 : vector<8x128xf32>
    %c0_8 = arith.constant 0 : index
    %c0_9 = arith.constant 0 : index
    %8 = vector.load %arg4[%c0_8, %c0_9] : memref<128x128xf32, #tpu.memory_space<vmem>>, vector<128x128xf32>
    %cst = arith.constant dense<0.000000e+00> : vector<8x128xf32>
    %9 = tpu.matmul %7, %8, %cst {dimension_numbers = #tpu.dot_dimension_numbers<[1], [0], [0], [1], [0, 0, 1, 1], [], []>} : vector<8x128xf32>, vector<128x128xf32>, vector<8x128xf32> -> vector<8x128xf32>
    %10 = arith.subf %3, %4 : vector<8x128xf32>
    %c0_10 = arith.constant 0 : index
    %c0_11 = arith.constant 0 : index
    %11 = vector.load %arg5[%c0_10, %c0_11] : memref<128x128xf32, #tpu.memory_space<vmem>>, vector<128x128xf32>
    %cst_12 = arith.constant dense<0.000000e+00> : vector<8x128xf32>
    %12 = tpu.matmul %10, %11, %cst_12 {dimension_numbers = #tpu.dot_dimension_numbers<[1], [0], [0], [1], [0, 0, 1, 1], [], []>} : vector<8x128xf32>, vector<128x128xf32>, vector<8x128xf32> -> vector<8x128xf32>
    %c0_13 = arith.constant 0 : index
    %c0_14 = arith.constant 0 : index
    %13 = vector.load %arg6[%c0_13, %c0_14] : memref<128x128xf32, #tpu.memory_space<vmem>>, vector<128x128xf32>
    %cst_15 = arith.constant dense<0.000000e+00> : vector<8x128xf32>
    %14 = tpu.matmul %5, %13, %cst_15 {dimension_numbers = #tpu.dot_dimension_numbers<[1], [0], [0], [1], [0, 0, 1, 1], [], []>} : vector<8x128xf32>, vector<128x128xf32>, vector<8x128xf32> -> vector<8x128xf32>
    %15 = arith.addf %9, %12 : vector<8x128xf32>
    %cst_16 = arith.constant 5.000000e-01 : f32
    %16 = vector.broadcast %cst_16 : f32 to vector<8x128xf32>
    %17 = arith.mulf %16, %15 : vector<8x128xf32>
    %18 = arith.addf %17, %14 : vector<8x128xf32>
    %19 = vector.broadcast %6 : vector<1x128xf32> to vector<8x128xf32>
    %20 = arith.addf %18, %19 : vector<8x128xf32>
    %21 = arith.subf %9, %12 : vector<8x128xf32>
    %cst_17 = arith.constant 5.000000e-01 : f32
    %22 = vector.broadcast %cst_17 : f32 to vector<8x128xf32>
    %23 = arith.mulf %22, %21 : vector<8x128xf32>
    %24 = arith.subf %23, %14 : vector<8x128xf32>
    %25 = vector.broadcast %6 : vector<1x128xf32> to vector<8x128xf32>
    %26 = arith.addf %24, %25 : vector<8x128xf32>
    %27 = arith.truncf %20 : vector<8x128xf32> to vector<8x128xbf16>
    %c0_18 = arith.constant 0 : index
    %c0_19 = arith.constant 0 : index
    %c0_20 = arith.constant 0 : index
    %28 = vector.load %arg8[%c0_18, %c0_19, %c0_20] : memref<2x8x128xbf16, #tpu.memory_space<vmem>>, vector<1x8x128xbf16>
    %29 = vector.shape_cast %28 : vector<1x8x128xbf16> to vector<8x128xbf16>
    %30 = vector.shape_cast %27 : vector<8x128xbf16> to vector<1x8x128xbf16>
    tpu.vector_store %arg8[%c0_18, %c0_19, %c0_20], %30 {strides = array<i32>} : memref<2x8x128xbf16, #tpu.memory_space<vmem>>, vector<1x8x128xbf16>,
    %31 = arith.truncf %26 : vector<8x128xf32> to vector<8x128xbf16>
    %c1 = arith.constant 1 : index
    %c0_21 = arith.constant 0 : index
    %c0_22 = arith.constant 0 : index
    %32 = vector.load %arg8[%c1, %c0_21, %c0_22] : memref<2x8x128xbf16, #tpu.memory_space<vmem>>, vector<1x8x128xbf16>
    %33 = vector.shape_cast %32 : vector<1x8x128xbf16> to vector<8x128xbf16>
    %34 = vector.shape_cast %31 : vector<8x128xbf16> to vector<1x8x128xbf16>
    tpu.vector_store %arg8[%c1, %c0_21, %c0_22], %34 {strides = array<i32>} : memref<2x8x128xbf16, #tpu.memory_space<vmem>>, vector<1x8x128xbf16>,
    %c0_23 = arith.constant 0 : index
    %c0_24 = arith.constant 0 : index
    %35 = vector.load %arg9[%c0_23, %c0_24] : memref<1x128xf32, #tpu.memory_space<vmem>>, vector<1x128xf32>
    %36 = arith.addf %20, %26 : vector<8x128xf32>
    %cst_25 = arith.constant dense<0.000000e+00> : vector<128xf32>
    %37 = vector.multi_reduction <add>, %36, %cst_25 [0] : vector<8x128xf32> to vector<128xf32>
    %38 = vector.shape_cast %37 : vector<128xf32> to vector<1x128xf32>
    %39 = arith.addf %35, %38 : vector<1x128xf32>
    %c0_26 = arith.constant 0 : index
    %c0_27 = arith.constant 0 : index
    %40 = vector.load %arg9[%c0_26, %c0_27] : memref<1x128xf32, #tpu.memory_space<vmem>>, vector<1x128xf32>
    tpu.vector_store %arg9[%c0_26, %c0_27], %39 {strides = array<i32>} : memref<1x128xf32, #tpu.memory_space<vmem>>, vector<1x128xf32>,
    %c0_28 = arith.constant 0 : index
    %c0_29 = arith.constant 0 : index
    %41 = vector.load %arg10[%c0_28, %c0_29] : memref<1x128xf32, #tpu.memory_space<vmem>>, vector<1x128xf32>
    %42 = arith.mulf %20, %20 : vector<8x128xf32>
    %43 = arith.mulf %26, %26 : vector<8x128xf32>
    %44 = arith.addf %42, %43 : vector<8x128xf32>
    %cst_30 = arith.constant dense<0.000000e+00> : vector<128xf32>
    %45 = vector.multi_reduction <add>, %44, %cst_30 [0] : vector<8x128xf32> to vector<128xf32>
    %46 = vector.shape_cast %45 : vector<128xf32> to vector<1x128xf32>
    %47 = arith.addf %41, %46 : vector<1x128xf32>
    %c0_31 = arith.constant 0 : index
    %c0_32 = arith.constant 0 : index
    %48 = vector.load %arg10[%c0_31, %c0_32] : memref<1x128xf32, #tpu.memory_space<vmem>>, vector<1x128xf32>
    tpu.vector_store %arg10[%c0_31, %c0_32], %47 {strides = array<i32>} : memref<1x128xf32, #tpu.memory_space<vmem>>, vector<1x128xf32>,
    return
  }
  func.func @transform_0(%arg0: i32) -> (i32, i32) {
    %c0_i32 = arith.constant 0 : i32
    %c0_i32_0 = arith.constant 0 : i32
    return %arg0, %c0_i32 : i32, i32
  }
  func.func @transform_1(%arg0: i32) -> (i32, i32) {
    %c0_i32 = arith.constant 0 : i32
    %c0_i32_0 = arith.constant 0 : i32
    return %arg0, %c0_i32 : i32, i32
  }
  func.func @transform_2(%arg0: i32) -> (i32, i32) {
    %c0_i32 = arith.constant 0 : i32
    %c0_i32_0 = arith.constant 0 : i32
    return %arg0, %c0_i32 : i32, i32
  }
  func.func @transform_3(%arg0: i32) -> (i32, i32) {
    %c0_i32 = arith.constant 0 : i32
    %c0_i32_0 = arith.constant 0 : i32
    %c0_i32_1 = arith.constant 0 : i32
    return %c0_i32, %c0_i32_0 : i32, i32
  }
  func.func @transform_4(%arg0: i32) -> (i32, i32) {
    %c0_i32 = arith.constant 0 : i32
    %c0_i32_0 = arith.constant 0 : i32
    %c0_i32_1 = arith.constant 0 : i32
    return %c0_i32, %c0_i32_0 : i32, i32
  }
  func.func @transform_5(%arg0: i32) -> (i32, i32) {
    %c0_i32 = arith.constant 0 : i32
    %c0_i32_0 = arith.constant 0 : i32
    %c0_i32_1 = arith.constant 0 : i32
    return %c0_i32, %c0_i32_0 : i32, i32
  }
  func.func @transform_6(%arg0: i32) -> (i32, i32) {
    %c0_i32 = arith.constant 0 : i32
    %c0_i32_0 = arith.constant 0 : i32
    %c0_i32_1 = arith.constant 0 : i32
    return %c0_i32, %c0_i32_0 : i32, i32
  }
  func.func @transform_7(%arg0: i32) -> (i32, i32, i32) {
    %c0_i32 = arith.constant 0 : i32
    %c0_i32_0 = arith.constant 0 : i32
    %c0_i32_1 = arith.constant 0 : i32
    return %c0_i32, %arg0, %c0_i32_0 : i32, i32, i32
  }
  func.func @transform_8(%arg0: i32) -> (i32, i32) {
    %c0_i32 = arith.constant 0 : i32
    %c0_i32_0 = arith.constant 0 : i32
    %c0_i32_1 = arith.constant 0 : i32
    return %c0_i32, %c0_i32_0 : i32, i32
  }
  func.func @transform_9(%arg0: i32) -> (i32, i32) {
    %c0_i32 = arith.constant 0 : i32
    %c0_i32_0 = arith.constant 0 : i32
    %c0_i32_1 = arith.constant 0 : i32
    return %c0_i32, %c0_i32_0 : i32, i32
  }
}

module attributes {stable_mosaic.version = 11 : i64} {
  func.func @_pass2_kernel(%arg0: i32, %arg1: memref<2x8x128xbf16, #tpu.memory_space<vmem>>, %arg2: memref<1x128xf32, #tpu.memory_space<vmem>>, %arg3: memref<1x128xf32, #tpu.memory_space<vmem>>, %arg4: memref<1x128xf32, #tpu.memory_space<vmem>>, %arg5: memref<1x1xf32, #tpu.memory_space<vmem>>, %arg6: memref<1x8xi32, #tpu.memory_space<vmem>>, %arg7: memref<1x8xi32, #tpu.memory_space<vmem>>, %arg8: memref<1x8xi32, #tpu.memory_space<vmem>>, %arg9: memref<16x1xi32, #tpu.memory_space<vmem>>, %arg10: memref<8x1xi32, #tpu.memory_space<vmem>>, %arg11: memref<1x128xi32, #tpu.memory_space<vmem>>, %arg12: memref<16x128xf32, #tpu.memory_space<vmem>>, %arg13: memref<8x128xf32, #tpu.memory_space<vmem>>) attributes {dimension_semantics = [#tpu.dimension_semantics<arbitrary>], iteration_bounds = array<i64: 1>, scalar_prefetch = 0 : i64, scratch_operands = 0 : i64, tpu.core_type = #tpu.core_type<tc>, window_params = [{transform_indices = @transform_0, window_bounds = array<i64: 2, 8, 128>}, {pipeline_mode = #tpu.pipeline_mode<synchronous>, transform_indices = @transform_1, window_bounds = array<i64: 1, 128>}, {pipeline_mode = #tpu.pipeline_mode<synchronous>, transform_indices = @transform_2, window_bounds = array<i64: 1, 128>}, {pipeline_mode = #tpu.pipeline_mode<synchronous>, transform_indices = @transform_3, window_bounds = array<i64: 1, 128>}, {pipeline_mode = #tpu.pipeline_mode<synchronous>, transform_indices = @transform_4, window_bounds = array<i64: 1, 1>}, {transform_indices = @transform_5, window_bounds = array<i64: 1, 8>}, {transform_indices = @transform_6, window_bounds = array<i64: 1, 8>}, {transform_indices = @transform_7, window_bounds = array<i64: 1, 8>}, {pipeline_mode = #tpu.pipeline_mode<synchronous>, transform_indices = @transform_8, window_bounds = array<i64: 16, 1>}, {pipeline_mode = #tpu.pipeline_mode<synchronous>, transform_indices = @transform_9, window_bounds = array<i64: 8, 1>}, {pipeline_mode = #tpu.pipeline_mode<synchronous>, transform_indices = @transform_10, window_bounds = array<i64: 1, 128>}, {pipeline_mode = #tpu.pipeline_mode<synchronous>, transform_indices = @transform_11, window_bounds = array<i64: 16, 128>}, {pipeline_mode = #tpu.pipeline_mode<synchronous>, transform_indices = @transform_12, window_bounds = array<i64: 8, 128>}]} {
    %c0_i32 = arith.constant 0 : i32
    %0 = arith.cmpi eq, %arg0, %c0_i32 : i32
    %1 = arith.extui %0 : i1 to i32
    %c0_i32_0 = arith.constant 0 : i32
    %2 = arith.cmpi ne, %1, %c0_i32_0 : i32
    scf.if %2 {
      %cst_43 = arith.constant 0.000000e+00 : f32
      %100 = vector.broadcast %cst_43 : f32 to vector<16x128xf32>
      %c0_44 = arith.constant 0 : index
      %c0_45 = arith.constant 0 : index
      %101 = vector.load %arg12[%c0_44, %c0_45] : memref<16x128xf32, #tpu.memory_space<vmem>>, vector<16x128xf32>
      tpu.vector_store %arg12[%c0_44, %c0_45], %100 {strides = array<i32>} : memref<16x128xf32, #tpu.memory_space<vmem>>, vector<16x128xf32>,
      %cst_46 = arith.constant 0.000000e+00 : f32
      %102 = vector.broadcast %cst_46 : f32 to vector<8x128xf32>
      %c0_47 = arith.constant 0 : index
      %c0_48 = arith.constant 0 : index
      %103 = vector.load %arg13[%c0_47, %c0_48] : memref<8x128xf32, #tpu.memory_space<vmem>>, vector<8x128xf32>
      tpu.vector_store %arg13[%c0_47, %c0_48], %102 {strides = array<i32>} : memref<8x128xf32, #tpu.memory_space<vmem>>, vector<8x128xf32>,
    } else {
    }
    %c0 = arith.constant 0 : index
    %c0_1 = arith.constant 0 : index
    %3 = vector.load %arg2[%c0, %c0_1] : memref<1x128xf32, #tpu.memory_space<vmem>>, vector<1x128xf32>
    %c0_2 = arith.constant 0 : index
    %c0_3 = arith.constant 0 : index
    %4 = vector.load %arg3[%c0_2, %c0_3] : memref<1x128xf32, #tpu.memory_space<vmem>>, vector<1x128xf32>
    %c0_4 = arith.constant 0 : index
    %c0_5 = arith.constant 0 : index
    %5 = vector.load %arg4[%c0_4, %c0_5] : memref<1x128xf32, #tpu.memory_space<vmem>>, vector<1x128xf32>
    %c0_6 = arith.constant 0 : index
    %c0_7 = arith.constant 0 : index
    %6 = vector.load %arg5[%c0_6, %c0_7] : memref<1x1xf32, #tpu.memory_space<vmem>>, vector<1x1xf32>
    %7 = vector.extract %6[0, 0] : f32 from vector<1x1xf32>
    %c0_8 = arith.constant 0 : index
    %c0_9 = arith.constant 0 : index
    %8 = vector.load %arg11[%c0_8, %c0_9] : memref<1x128xi32, #tpu.memory_space<vmem>>, vector<1x128xi32>
    %c32_i32 = arith.constant 32 : i32
    %9 = vector.broadcast %c32_i32 : i32 to vector<1x128xi32>
    %10 = arith.cmpi eq, %8, %9 : vector<1x128xi32>
    %c0_10 = arith.constant 0 : index
    %c0_11 = arith.constant 0 : index
    %c0_12 = arith.constant 0 : index
    %11 = vector.load %arg1[%c0_10, %c0_11, %c0_12] : memref<2x8x128xbf16, #tpu.memory_space<vmem>>, vector<1x8x128xbf16>
    %12 = vector.shape_cast %11 : vector<1x8x128xbf16> to vector<8x128xbf16>
    %13 = arith.extf %12 : vector<8x128xbf16> to vector<8x128xf32>
    %14 = vector.broadcast %3 : vector<1x128xf32> to vector<8x128xf32>
    %15 = arith.mulf %13, %14 : vector<8x128xf32>
    %16 = vector.broadcast %4 : vector<1x128xf32> to vector<8x128xf32>
    %17 = arith.addf %15, %16 : vector<8x128xf32>
    %18 = vector.broadcast %5 : vector<1x128xf32> to vector<8x128xf32>
    %19 = arith.mulf %17, %18 : vector<8x128xf32>
    %cst = arith.constant dense<0.000000e+00> : vector<8xf32>
    %20 = vector.multi_reduction <add>, %19, %cst [1] : vector<8x128xf32> to vector<8xf32>
    %21 = vector.shape_cast %20 : vector<8xf32> to vector<8x1xf32>
    %22 = vector.broadcast %7 : f32 to vector<8x1xf32>
    %23 = arith.addf %21, %22 : vector<8x1xf32>
    %cst_13 = arith.constant 0.000000e+00 : f32
    %24 = vector.broadcast %cst_13 : f32 to vector<8x1xf32>
    %25 = arith.cmpf oge, %23, %24 : vector<8x1xf32>
    %cst_14 = arith.constant 0.00999999977 : f32
    %26 = vector.broadcast %cst_14 : f32 to vector<8x1xf32>
    %27 = arith.mulf %26, %23 : vector<8x1xf32>
    %28 = arith.select %25, %23, %27 : vector<8x1xi1>, vector<8x1xf32>
    %cst_15 = arith.constant 0.000000e+00 : f32
    %29 = vector.broadcast %cst_15 : f32 to vector<8x1xf32>
    %30 = arith.subf %29, %28 : vector<8x1xf32>
    %31 = math.exp %30 : vector<8x1xf32>
    %32 = vector.broadcast %31 : vector<8x1xf32> to vector<8x128xf32>
    %33 = arith.mulf %32, %17 : vector<8x128xf32>
    %c1 = arith.constant 1 : index
    %c0_16 = arith.constant 0 : index
    %c0_17 = arith.constant 0 : index
    %34 = vector.load %arg1[%c1, %c0_16, %c0_17] : memref<2x8x128xbf16, #tpu.memory_space<vmem>>, vector<1x8x128xbf16>
    %35 = vector.shape_cast %34 : vector<1x8x128xbf16> to vector<8x128xbf16>
    %36 = arith.extf %35 : vector<8x128xbf16> to vector<8x128xf32>
    %37 = vector.broadcast %3 : vector<1x128xf32> to vector<8x128xf32>
    %38 = arith.mulf %36, %37 : vector<8x128xf32>
    %39 = vector.broadcast %4 : vector<1x128xf32> to vector<8x128xf32>
    %40 = arith.addf %38, %39 : vector<8x128xf32>
    %41 = vector.broadcast %5 : vector<1x128xf32> to vector<8x128xf32>
    %42 = arith.mulf %40, %41 : vector<8x128xf32>
    %cst_18 = arith.constant dense<0.000000e+00> : vector<8xf32>
    %43 = vector.multi_reduction <add>, %42, %cst_18 [1] : vector<8x128xf32> to vector<8xf32>
    %44 = vector.shape_cast %43 : vector<8xf32> to vector<8x1xf32>
    %45 = vector.broadcast %7 : f32 to vector<8x1xf32>
    %46 = arith.addf %44, %45 : vector<8x1xf32>
    %cst_19 = arith.constant 0.000000e+00 : f32
    %47 = vector.broadcast %cst_19 : f32 to vector<8x1xf32>
    %48 = arith.cmpf oge, %46, %47 : vector<8x1xf32>
    %cst_20 = arith.constant 0.00999999977 : f32
    %49 = vector.broadcast %cst_20 : f32 to vector<8x1xf32>
    %50 = arith.mulf %49, %46 : vector<8x1xf32>
    %51 = arith.select %48, %46, %50 : vector<8x1xi1>, vector<8x1xf32>
    %cst_21 = arith.constant 0.000000e+00 : f32
    %52 = vector.broadcast %cst_21 : f32 to vector<8x1xf32>
    %53 = arith.subf %52, %51 : vector<8x1xf32>
    %54 = math.exp %53 : vector<8x1xf32>
    %55 = vector.broadcast %54 : vector<8x1xf32> to vector<8x128xf32>
    %56 = arith.mulf %55, %40 : vector<8x128xf32>
    %57 = vector.shape_cast %10 : vector<1x128xi1> to vector<1x128xi1>
    %58 = vector.broadcast %57 : vector<1x128xi1> to vector<8x128xi1>
    %59 = vector.shape_cast %31 : vector<8x1xf32> to vector<8x1xf32>
    %60 = vector.broadcast %59 : vector<8x1xf32> to vector<8x128xf32>
    %61 = arith.select %58, %60, %33 : vector<8x128xi1>, vector<8x128xf32>
    %62 = vector.shape_cast %10 : vector<1x128xi1> to vector<1x128xi1>
    %63 = vector.broadcast %62 : vector<1x128xi1> to vector<8x128xi1>
    %64 = vector.shape_cast %54 : vector<8x1xf32> to vector<8x1xf32>
    %65 = vector.broadcast %64 : vector<8x1xf32> to vector<8x128xf32>
    %66 = arith.select %63, %65, %56 : vector<8x128xi1>, vector<8x128xf32>
    %67 = tpu.concatenate %61, %66 in 0 : vector<8x128xf32>, vector<8x128xf32> -> vector<16x128xf32>
    %68 = arith.truncf %67 : vector<16x128xf32> to vector<16x128xbf16>
    %c0_22 = arith.constant 0 : index
    %c0_23 = arith.constant 0 : index
    %69 = vector.load %arg6[%c0_22, %c0_23] : memref<1x8xi32, #tpu.memory_space<vmem>>, vector<1x8xi32>
    %c0_24 = arith.constant 0 : index
    %c0_25 = arith.constant 0 : index
    %70 = vector.load %arg7[%c0_24, %c0_25] : memref<1x8xi32, #tpu.memory_space<vmem>>, vector<1x8xi32>
    %71 = tpu.concatenate %69, %70 in 1 : vector<1x8xi32>, vector<1x8xi32> -> vector<1x16xi32>
    %c0_26 = arith.constant 0 : index
    %c0_27 = arith.constant 0 : index
    %72 = vector.load %arg9[%c0_26, %c0_27] : memref<16x1xi32, #tpu.memory_space<vmem>>, vector<16x1xi32>
    %73 = vector.broadcast %72 : vector<16x1xi32> to vector<16x16xi32>
    %74 = vector.broadcast %71 : vector<1x16xi32> to vector<16x16xi32>
    %75 = arith.cmpi eq, %73, %74 : vector<16x16xi32>
    %76 = arith.extui %75 : vector<16x16xi1> to vector<16x16xi32>
    %77 = arith.sitofp %76 : vector<16x16xi32> to vector<16x16xf32>
    %78 = arith.truncf %77 : vector<16x16xf32> to vector<16x16xbf16>
    %c0_28 = arith.constant 0 : index
    %c0_29 = arith.constant 0 : index
    %79 = vector.load %arg12[%c0_28, %c0_29] : memref<16x128xf32, #tpu.memory_space<vmem>>, vector<16x128xf32>
    %cst_30 = arith.constant dense<0.000000e+00> : vector<16x128xf32>
    %80 = tpu.matmul %78, %68, %cst_30 {dimension_numbers = #tpu.dot_dimension_numbers<[1], [0], [0], [1], [0, 0, 1, 1], [], []>} : vector<16x16xbf16>, vector<16x128xbf16>, vector<16x128xf32> -> vector<16x128xf32>
    %81 = arith.addf %79, %80 : vector<16x128xf32>
    %c0_31 = arith.constant 0 : index
    %c0_32 = arith.constant 0 : index
    %82 = vector.load %arg12[%c0_31, %c0_32] : memref<16x128xf32, #tpu.memory_space<vmem>>, vector<16x128xf32>
    tpu.vector_store %arg12[%c0_31, %c0_32], %81 {strides = array<i32>} : memref<16x128xf32, #tpu.memory_space<vmem>>, vector<16x128xf32>,
    %cst_33 = arith.constant 1.000000e+00 : f32
    %83 = vector.shape_cast %10 : vector<1x128xi1> to vector<1x128xi1>
    %84 = vector.broadcast %83 : vector<1x128xi1> to vector<8x128xi1>
    %85 = vector.broadcast %cst_33 : f32 to vector<8x128xf32>
    %86 = arith.select %84, %85, %33 : vector<8x128xi1>, vector<8x128xf32>
    %87 = arith.truncf %86 : vector<8x128xf32> to vector<8x128xbf16>
    %c0_34 = arith.constant 0 : index
    %c0_35 = arith.constant 0 : index
    %88 = vector.load %arg10[%c0_34, %c0_35] : memref<8x1xi32, #tpu.memory_space<vmem>>, vector<8x1xi32>
    %c0_36 = arith.constant 0 : index
    %c0_37 = arith.constant 0 : index
    %89 = vector.load %arg8[%c0_36, %c0_37] : memref<1x8xi32, #tpu.memory_space<vmem>>, vector<1x8xi32>
    %90 = vector.broadcast %88 : vector<8x1xi32> to vector<8x8xi32>
    %91 = vector.broadcast %89 : vector<1x8xi32> to vector<8x8xi32>
    %92 = arith.cmpi eq, %90, %91 : vector<8x8xi32>
    %93 = arith.extui %92 : vector<8x8xi1> to vector<8x8xi32>
    %94 = arith.sitofp %93 : vector<8x8xi32> to vector<8x8xf32>
    %95 = arith.truncf %94 : vector<8x8xf32> to vector<8x8xbf16>
    %c0_38 = arith.constant 0 : index
    %c0_39 = arith.constant 0 : index
    %96 = vector.load %arg13[%c0_38, %c0_39] : memref<8x128xf32, #tpu.memory_space<vmem>>, vector<8x128xf32>
    %cst_40 = arith.constant dense<0.000000e+00> : vector<8x128xf32>
    %97 = tpu.matmul %95, %87, %cst_40 {dimension_numbers = #tpu.dot_dimension_numbers<[1], [0], [0], [1], [0, 0, 1, 1], [], []>} : vector<8x8xbf16>, vector<8x128xbf16>, vector<8x128xf32> -> vector<8x128xf32>
    %98 = arith.addf %96, %97 : vector<8x128xf32>
    %c0_41 = arith.constant 0 : index
    %c0_42 = arith.constant 0 : index
    %99 = vector.load %arg13[%c0_41, %c0_42] : memref<8x128xf32, #tpu.memory_space<vmem>>, vector<8x128xf32>
    tpu.vector_store %arg13[%c0_41, %c0_42], %98 {strides = array<i32>} : memref<8x128xf32, #tpu.memory_space<vmem>>, vector<8x128xf32>,
    return
  }
  func.func @transform_0(%arg0: i32) -> (i32, i32, i32) {
    %c0_i32 = arith.constant 0 : i32
    %c0_i32_0 = arith.constant 0 : i32
    %c0_i32_1 = arith.constant 0 : i32
    return %c0_i32, %arg0, %c0_i32_0 : i32, i32, i32
  }
  func.func @transform_1(%arg0: i32) -> (i32, i32) {
    %c0_i32 = arith.constant 0 : i32
    %c0_i32_0 = arith.constant 0 : i32
    %c0_i32_1 = arith.constant 0 : i32
    return %c0_i32, %c0_i32_0 : i32, i32
  }
  func.func @transform_2(%arg0: i32) -> (i32, i32) {
    %c0_i32 = arith.constant 0 : i32
    %c0_i32_0 = arith.constant 0 : i32
    %c0_i32_1 = arith.constant 0 : i32
    return %c0_i32, %c0_i32_0 : i32, i32
  }
  func.func @transform_3(%arg0: i32) -> (i32, i32) {
    %c0_i32 = arith.constant 0 : i32
    %c0_i32_0 = arith.constant 0 : i32
    %c0_i32_1 = arith.constant 0 : i32
    return %c0_i32, %c0_i32_0 : i32, i32
  }
  func.func @transform_4(%arg0: i32) -> (i32, i32) {
    %c0_i32 = arith.constant 0 : i32
    %c0_i32_0 = arith.constant 0 : i32
    %c0_i32_1 = arith.constant 0 : i32
    return %c0_i32, %c0_i32_0 : i32, i32
  }
  func.func @transform_5(%arg0: i32) -> (i32, i32) {
    %c0_i32 = arith.constant 0 : i32
    %c0_i32_0 = arith.constant 0 : i32
    return %c0_i32, %arg0 : i32, i32
  }
  func.func @transform_6(%arg0: i32) -> (i32, i32) {
    %c0_i32 = arith.constant 0 : i32
    %c0_i32_0 = arith.constant 0 : i32
    return %c0_i32, %arg0 : i32, i32
  }
  func.func @transform_7(%arg0: i32) -> (i32, i32) {
    %c0_i32 = arith.constant 0 : i32
    %c0_i32_0 = arith.constant 0 : i32
    return %c0_i32, %arg0 : i32, i32
  }
  func.func @transform_8(%arg0: i32) -> (i32, i32) {
    %c0_i32 = arith.constant 0 : i32
    %c0_i32_0 = arith.constant 0 : i32
    %c0_i32_1 = arith.constant 0 : i32
    return %c0_i32, %c0_i32_0 : i32, i32
  }
  func.func @transform_9(%arg0: i32) -> (i32, i32) {
    %c0_i32 = arith.constant 0 : i32
    %c0_i32_0 = arith.constant 0 : i32
    %c0_i32_1 = arith.constant 0 : i32
    return %c0_i32, %c0_i32_0 : i32, i32
  }
  func.func @transform_10(%arg0: i32) -> (i32, i32) {
    %c0_i32 = arith.constant 0 : i32
    %c0_i32_0 = arith.constant 0 : i32
    %c0_i32_1 = arith.constant 0 : i32
    return %c0_i32, %c0_i32_0 : i32, i32
  }
  func.func @transform_11(%arg0: i32) -> (i32, i32) {
    %c0_i32 = arith.constant 0 : i32
    %c0_i32_0 = arith.constant 0 : i32
    %c0_i32_1 = arith.constant 0 : i32
    return %c0_i32, %c0_i32_0 : i32, i32
  }
  func.func @transform_12(%arg0: i32) -> (i32, i32) {
    %c0_i32 = arith.constant 0 : i32
    %c0_i32_0 = arith.constant 0 : i32
    %c0_i32_1 = arith.constant 0 : i32
    return %c0_i32, %c0_i32_0 : i32, i32
  }
}

</mosaic_0001>

<bundles_post_ra>
// kernel: rot_att_forward.3
= control target key start
LH: loop header
LB: loop body
LE: loop exit
PB: predicated region body
PF: predicated region fallthrough
CT: control target
= control target key end

     0   :  { %v308_v0 = vmov 0   ;;  %v310_v19 = vmov 0.0   ;;  %vm311_vm0 = vmmov 0   ;;  %v108_v29 = vlaneseq  ;;  %s434_s0 = inlined_call_operand.vmem [shape: bf16[2,8,128], index: 0, kind: input, shape index: {}]   ;;  %s435_s1 = inlined_call_operand.vmem [shape: f32[1,128], index: 1, kind: input, shape index: {}]   ;;  %s436_s8 = inlined_call_operand.vmem [shape: s32[16,1], index: 8, kind: input, shape index: {}]   ;;  %s437_s4 = inlined_call_operand.<no memory space> [shape: f32[1,1], index: 4, kind: input, shape index: {}]   ;;  %s438_s2 = inlined_call_operand.vmem [shape: f32[1,128], index: 2, kind: input, shape index: {}]   ;;  %s439_s3 = inlined_call_operand.vmem [shape: f32[1,128], index: 3, kind: input, shape index: {}]   ;;  %s440_s6 = inlined_call_operand.vmem [shape: s32[1,8], index: 6, kind: input, shape index: {}]   ;;  %s441_s9 = inlined_call_operand.vmem [shape: s32[8,1], index: 9, kind: input, shape index: {}]   ;;  %s442_s10 = inlined_call_operand.vmem [shape: s32[1,128], index: 10, kind: input, shape index: {}]   ;;  %s443_s5 = inlined_call_operand.vmem [shape: s32[1,8], index: 5, kind: input, shape index: {}]   ;;  %s444_s7 = inlined_call_operand.vmem [shape: s32[1,8], index: 7, kind: input, shape index: {}]   ;;  %s445_s12 = inlined_call_operand.vmem [shape: f32[8,128], index: 12, kind: output, shape index: {1}]   ;;  %s446_s11 = inlined_call_operand.vmem [shape: f32[16,128], index: 11, kind: output, shape index: {0}]  }
   0x1   :  { %302 = vset.pattern.permute.xlu1 %v308_v0  ;;  %303 = vset.pattern.permute.xlu0 %v308_v0  ;;  %v18_v1 = vstv %s437_s4  ;;  %v269_v2 = vld [vmem:[%s435_s1] ss:$0 sm:$0xff]  ;;  %v127_v8 = vld [vmem:[%s436_s8 + $0x8] sm:$0xff]  ;;  %vm124_vm4 = vcmask 64512   ;;  %vm215_vm7 = vcmask 1043456   ;;  %vm147_vm10 = vcmask 130048  }
   0x2   :  { %v57_v3 = vld [vmem:[%s434_s0] sm:$0xff]   ;;  %19 = vst [vmem:[#allocation2] sm:$0x1] %v18_v1  ;;  %290 = vmatprep.subr.bf16.mxu1 %v310_v19  ;;  %284 = vmatprep.subr.bf16.mxu0 %v310_v19  ;;  %v109_v36 = vshrl.u32 %v108_v29, 7 }
   0x3   :  { %v126_v4 = vld [vmem:[%s436_s8] sm:$0xff]  ;;  %v58_v5 = vunpack.c.l.bf16 %v57_v3  ;;  %v93_v6 = vunpack.c.h.bf16 %v57_v3  ;;  %292 = vmatprep.mubr.msk.bf16.mxu1 %vm311_vm0, %v310_v19  ;;  %286 = vmatprep.mubr.msk.bf16.mxu0 %vm311_vm0, %v310_v19 }
   0x4   :  { %129 = vperm.xlu1 %302, %v126_v4   ;;  %v270_v7 = vld [vmem:[%s438_s2] ss:$0 sm:$0xff]  ;;  %s309_s2 = smov 8   ;;  %v110_v39 = vsub.s32 0, %v109_v36 }
   0x5   :  { %v65_v9 = vmul.f32 %v269_v2, %v58_v5  ;;  %v94_v10 = vmul.f32 %v269_v2, %v93_v6  ;;  %v271_v11 = vld [vmem:[%s439_s3] ss:$0 sm:$0xff] }
   0x6   :  { %v273_v14 = vld [vmem:[%s440_s6] ss:$0 sm:$0xff] }
   0x7   :  { %v72_v12 = vadd.f32 %v270_v7, %v65_v9  ;;  %v400_v13 = vadd.f32 %v270_v7, %v94_v10  ;;  %v198_v18 = vld [vmem:[%s441_s9] sm:$0xff] }
   0x8   :  { %132 = vperm.xlu1 %302, %v127_v8   ;;  %v55_v30 = vld [vmem:[%s442_s10] sm:$0x1] }
   0x9   :  { %v79_v15 = vmul.f32 %v271_v11, %v72_v12  ;;  %v53_v16 = vld [vmem:[#allocation2] sm:$0x1]  ;;  %v96_v17 = vmul.f32 %v271_v11, %v400_v13  ;;  %vm56_vm3 = vcmp.eq.s32.totalorder %v55_v30, 32 }
   0xa   :  { %296 = vpush %v53_v16  ;;  %v107_v38 = vsel %vm56_vm3, 1, %v308_v0  ;;  %v116_v41 = vld [vmem:[%s443_s5] sm:$0x1] }
   0xb   :  { %80 = vadd.xlane.f32.xlu0 %v79_v15  ;;  %v111_v42 = vrot.slane %v107_v38, %v110_v39  ;;  %v277_v43 = vld [vmem:[%s444_s7] ss:$0 sm:$0xff] }
   0xc   :  { %122 = vrot.lane.b32.xlu1 %v273_v14, %s309_s2 }
   0xd   :  { %vm112_vm5 = vcmp.eq.s32.totalorder %v111_v42, 1 }
   0xf   :  { %97 = vadd.xlane.f32.xlu0 %v96_v17 }
  0x25   :  { %201 = vperm.xlu0 %303, %v198_v18  }
  0x3b   :  { %s297_s3 = spop %296 }
  0x3c   :  { %v82_v20 = vstv %s297_s3 }
  0x83   :  { %v130_v24 = vpop.permute.xlu1 %129 }
  0x87   :  { %v133_v34 = vpop.permute.xlu1 %132 }
  0x8b   :  { %v123_v40 = vpop.permute.xlu1 %122 }
  0x8c   :  { %v125_v45 = vsel %vm124_vm4, %v116_v41, %v123_v40 }
  0x8d   :  { %v137_v47 = vrot.slane %v125_v45, %v110_v39 }
  0x8f   :  { %vm138_vm8 = vcmp.eq.s32.totalorder %v130_v24, %v137_v47  ;;  %vm139_vm9 = vcmp.eq.s32.totalorder %v133_v34, %v137_v47 }
  0x90   :  { %v274_v58 = vsel %vm138_vm8, 1.0, %v310_v19  ;;  %v275_v59 = vsel %vm139_vm9, 1.0, %v310_v19 }
  0x91   :  { %v144_v61 = vpack.c.bf16 %v275_v59, %v274_v58 }
  0x98   :  { %v81_v21 = vpop.xlane.xlu0 %80 }
  0x99   :  { %v83_v22 = vadd.f32 %v82_v20, %v81_v21 }
  0x9b   :  { %vm84_vm1 = vcmp.ge.f32.partialorder %v83_v22, 0.0  ;;  %v85_v23 = vmul.f32 0.01, %v83_v22 }
  0x9c   :  { %v98_v25 = vpop.xlane.xlu0 %97 }
  0x9d   :  { %v86_v26 = vsel %vm84_vm1, %v83_v22, %v85_v23  ;;  %v99_v27 = vadd.f32 %v98_v25, %v82_v20 }
  0x9e   :  { %v87_v28 = vsub.f32 0.0, %v86_v26 }
  0x9f   :  { %vm100_vm2 = vcmp.ge.f32.partialorder %v99_v27, 0.0  ;;  %v101_v31 = vmul.f32 0.01, %v99_v27 }
  0xa0   :  { %v88_v32 = vmul.f32 1.442695, %v87_v28 }
  0xa1   :  { %v102_v33 = vsel %vm100_vm2, %v99_v27, %v101_v31 }
  0xa2   :  { %304 = vpow2.f32 %v88_v32  ;;  %v103_v35 = vsub.f32 0.0, %v102_v33 }
  0xa4   :  { %v104_v37 = vmul.f32 1.442695, %v103_v35  ;;  %v202_v44 = vpop.permute.xlu0 %201 }
  0xa5   :  { %vm207_vm6 = vcmp.eq.s32.totalorder %v202_v44, %v277_v43 }
  0xa6   :  { %306 = vpow2.f32 %v104_v37  ;;  %v278_v50 = vsel %vm207_vm6, 1.0, %v310_v19 }
  0xa7   :  { %v210_v55 = vpack.c.bf16 %v278_v50, %v278_v50 }
  0xac   :  { %v305_v46 = vpop.eup %304 }
  0xad   :  { %v90_v48 = vmul.f32 %v305_v46, %v72_v12 }
  0xaf   :  { %v196_v49 = vsel %vm112_vm5, 1.0, %v90_v48  ;;  %v113_v56 = vsel %vm112_vm5, %v305_v46, %v90_v48 }
  0xb0   :  { %v307_v51 = vpop.eup %306  ;;  %v197_v52 = vpack.c.bf16 %v196_v49, %v196_v49 }
  0xb1   :  { %v106_v53 = vmul.f32 %v307_v51, %v400_v13 }
  0xb2   :  { %v217_v54 = vsel %vm215_vm7, %v197_v52, 0 }
  0xb3   :  { %291 = vmatpush3.bf16.msra.mxu1 %v217_v54  ;;  %v114_v57 = vsel %vm112_vm5, %v307_v51, %v106_v53 }
  0xb4   :  { %v115_v60 = vpack.c.bf16 %v114_v57, %v113_v56 }
  0xb6   :  { %285 = vmatpush3.bf16.msra.mxu0 %v115_v60  ;;  %293 = vmatmul.mubr.msk.bf16.vlgmr.msra.gmra.mrb[0].mxu1 %vm124_vm4, %v210_v55 }
  0xb9   :  { %287 = vmatmul.mubr.msk.bf16.vlgmr.msra.gmra.mrb[0].mxu0 %vm147_vm10, %v144_v61 }
 0x189   :  { %v253_v62 = vpop.f32.mrb[0].mxu1 }
 0x18a   :  { %v294_v63 = vpop.f32.mrb[1].mxu1  ;;  %260 = vst [vmem:[%s445_s12] sm:$0xff] %v253_v62 }
 0x18b   :  { %v256_v0 = vpop.f32.mrb[2].mxu1 }
 0x18c   :  { %v185_v1 = vpop.f32.mrb[0].mxu0  ;;  %v295_v2 = vpop.f32.mrb[3].mxu1 }
 0x18d   :  { %v288_v3 = vpop.f32.mrb[1].mxu0  ;;  %194 = vst [vmem:[%s446_s11] sm:$0xff] %v185_v1 }
 0x18e   :  { %v188_v4 = vpop.f32.mrb[2].mxu0 }
 0x18f   :  { %v289_v5 = vpop.f32.mrb[3].mxu0  ;;  %195 = vst [vmem:[%s446_s11 + $0x8] sm:$0xff] %v188_v4 }

// kernel: rot_att_forward.2
= control target key start
LH: loop header
LB: loop body
LE: loop exit
PB: predicated region body
PF: predicated region fallthrough
CT: control target
= control target key end

     0   :  { %v590_v0 = vmov 0.0|0.0   ;;  %v591_v4 = vmov 0.0   ;;  %vm592_vm0 = vmmov 0   ;;  %s852_s3 = inlined_call_operand.vmem [shape: f32[128,128], index: 3, kind: input, shape index: {}]   ;;  %s853_s4 = inlined_call_operand.vmem [shape: f32[128,128], index: 4, kind: input, shape index: {}]   ;;  %s854_s8 = inlined_call_operand.vmem [shape: f32[1,128], index: 8, kind: output, shape index: {1}]   ;;  %s855_s9 = inlined_call_operand.vmem [shape: f32[1,128], index: 9, kind: output, shape index: {2}]   ;;  %s856_s0 = inlined_call_operand.vmem [shape: f32[8,128], index: 0, kind: input, shape index: {}]   ;;  %s857_s1 = inlined_call_operand.vmem [shape: f32[8,128], index: 1, kind: input, shape index: {}]   ;;  %s858_s5 = inlined_call_operand.vmem [shape: f32[128,128], index: 5, kind: input, shape index: {}]   ;;  %s859_s2 = inlined_call_operand.vmem [shape: f32[8,128], index: 2, kind: input, shape index: {}]   ;;  %s860_s6 = inlined_call_operand.vmem [shape: f32[1,128], index: 6, kind: input, shape index: {}]   ;;  %s861_s7 = inlined_call_operand.vmem [shape: bf16[2,8,128], index: 7, kind: output, shape index: {0}]  }
   0x1   :  { %515 = vmatprep.subr.bf16.mxu0 %v590_v0  ;;  %v40_v1 = vld [vmem:[%s852_s3] sm:$0xff]  ;;  %v41_v2 = vld [vmem:[%s852_s3 + $0x8] sm:$0xff]  ;;  %539 = vmatprep.subr.bf16.mxu1 %v590_v0  ;;  %33 = vst [vmem:[%s854_s8] sm:$0x1] %v591_v4  ;;  %34 = vst [vmem:[%s855_s9] sm:$0x1] %v591_v4 }
   0x2   :  { %v127_v3 = vld [vmem:[%s853_s4] sm:$0xff]  ;;  %v516_v5 = vpack.c.bf16 %v41_v2, %v40_v1  ;;  %v128_v6 = vld [vmem:[%s853_s4 + $0x8] sm:$0xff]  ;;  %v42_v7 = vld [vmem:[%s852_s3 + $0x10] sm:$0xff]  ;;  %442 = vmatprep.mubr.msk.f32.mxu0 %vm592_vm0, %v591_v4  ;;  %477 = vmatprep.mubr.msk.f32.mxu1 %vm592_vm0, %v591_v4 }
   0x3   :  { %v43_v8 = vld [vmem:[%s852_s3 + $0x18] sm:$0xff]  ;;  %v540_v9 = vpack.c.bf16 %v128_v6, %v127_v3  ;;  %v129_v10 = vld [vmem:[%s853_s4 + $0x10] sm:$0xff]  ;;  %v44_v14 = vld [vmem:[%s852_s3 + $0x20] sm:$0xff] }
   0x4   :  { %v130_v11 = vld [vmem:[%s853_s4 + $0x18] sm:$0xff]  ;;  %517 = vmatpush3.bf16.msra.mxu0 %v516_v5  ;;  %v519_v12 = vpack.c.bf16 %v43_v8, %v42_v7  ;;  %v45_v15 = vld [vmem:[%s852_s3 + $0x28] sm:$0xff]  ;;  %v131_v16 = vld [vmem:[%s853_s4 + $0x20] sm:$0xff] }
   0x5   :  { %541 = vmatpush3.bf16.msra.mxu1 %v540_v9  ;;  %518 = vmatprep.subr.bf16.mxu0 %v590_v0  ;;  %v543_v13 = vpack.c.bf16 %v130_v11, %v129_v10  ;;  %v132_v17 = vld [vmem:[%s853_s4 + $0x28] sm:$0xff]  ;;  %v522_v18 = vpack.c.bf16 %v45_v15, %v44_v14  ;;  %v46_v20 = vld [vmem:[%s852_s3 + $0x30] sm:$0xff]  ;;  %v47_v21 = vld [vmem:[%s852_s3 + $0x38] sm:$0xff] }
   0x6   :  { %542 = vmatprep.subr.bf16.mxu1 %v590_v0  ;;  %v546_v19 = vpack.c.bf16 %v132_v17, %v131_v16  ;;  %v133_v22 = vld [vmem:[%s853_s4 + $0x30] sm:$0xff]  ;;  %v134_v23 = vld [vmem:[%s853_s4 + $0x38] sm:$0xff]  ;;  %v525_v24 = vpack.c.bf16 %v47_v21, %v46_v20  ;;  %v48_v26 = vld [vmem:[%s852_s3 + $0x40] sm:$0xff] }
   0x7   :  { %v549_v25 = vpack.c.bf16 %v134_v23, %v133_v22  ;;  %v49_v27 = vld [vmem:[%s852_s3 + $0x48] sm:$0xff]  ;;  %v135_v28 = vld [vmem:[%s853_s4 + $0x40] sm:$0xff]  ;;  %v50_v32 = vld [vmem:[%s852_s3 + $0x50] sm:$0xff] }
   0x8   :  { %520 = vmatpush3.bf16.msra.mxu0 %v519_v12  ;;  %v136_v29 = vld [vmem:[%s853_s4 + $0x48] sm:$0xff]  ;;  %v528_v30 = vpack.c.bf16 %v49_v27, %v48_v26  ;;  %v51_v33 = vld [vmem:[%s852_s3 + $0x58] sm:$0xff]  ;;  %v137_v34 = vld [vmem:[%s853_s4 + $0x50] sm:$0xff] }
   0x9   :  { %544 = vmatpush3.bf16.msra.mxu1 %v543_v13  ;;  %521 = vmatprep.subr.bf16.mxu0 %v590_v0  ;;  %v552_v31 = vpack.c.bf16 %v136_v29, %v135_v28  ;;  %v138_v35 = vld [vmem:[%s853_s4 + $0x58] sm:$0xff]  ;;  %v531_v36 = vpack.c.bf16 %v51_v33, %v50_v32  ;;  %v52_v38 = vld [vmem:[%s852_s3 + $0x60] sm:$0xff]  ;;  %v53_v39 = vld [vmem:[%s852_s3 + $0x68] sm:$0xff] }
   0xa   :  { %545 = vmatprep.subr.bf16.mxu1 %v590_v0  ;;  %v555_v37 = vpack.c.bf16 %v138_v35, %v137_v34  ;;  %v139_v40 = vld [vmem:[%s853_s4 + $0x60] sm:$0xff]  ;;  %v140_v41 = vld [vmem:[%s853_s4 + $0x68] sm:$0xff]  ;;  %v534_v42 = vpack.c.bf16 %v53_v39, %v52_v38  ;;  %v54_v44 = vld [vmem:[%s852_s3 + $0x70] sm:$0xff] }
   0xb   :  { %v558_v43 = vpack.c.bf16 %v140_v41, %v139_v40  ;;  %v55_v45 = vld [vmem:[%s852_s3 + $0x78] sm:$0xff]  ;;  %v141_v46 = vld [vmem:[%s853_s4 + $0x70] sm:$0xff]  ;;  %v35_v49 = vld [vmem:[%s856_s0] sm:$0xff] }
   0xc   :  { %523 = vmatpush3.bf16.msra.mxu0 %v522_v18  ;;  %v142_v47 = vld [vmem:[%s853_s4 + $0x78] sm:$0xff]  ;;  %v537_v48 = vpack.c.bf16 %v55_v45, %v54_v44  ;;  %v36_v50 = vld [vmem:[%s857_s1] sm:$0xff]  ;;  %v214_v53 = vld [vmem:[%s858_s5 + $0x8] sm:$0xff] }
   0xd   :  { %547 = vmatpush3.bf16.msra.mxu1 %v546_v19  ;;  %524 = vmatprep.subr.bf16.mxu0 %v590_v0  ;;  %v561_v51 = vpack.c.bf16 %v142_v47, %v141_v46  ;;  %v213_v52 = vld [vmem:[%s858_s5] sm:$0xff]  ;;  %v39_v54 = vadd.f32 %v36_v50, %v35_v49  ;;  %v126_v55 = vsub.f32 %v35_v49, %v36_v50  ;;  %v215_v57 = vld [vmem:[%s858_s5 + $0x10] sm:$0xff]  ;;  %v216_v58 = vld [vmem:[%s858_s5 + $0x18] sm:$0xff] }
   0xe   :  { %548 = vmatprep.subr.bf16.mxu1 %v590_v0  ;;  %v564_v56 = vpack.c.bf16 %v214_v53, %v213_v52  ;;  %v567_v59 = vpack.c.bf16 %v216_v58, %v215_v57  ;;  %v217_v60 = vld [vmem:[%s858_s5 + $0x20] sm:$0xff]  ;;  %v218_v61 = vld [vmem:[%s858_s5 + $0x28] sm:$0xff]  ;;  %v219_v63 = vld [vmem:[%s858_s5 + $0x30] sm:$0xff] }
   0xf   :  { %v570_v62 = vpack.c.bf16 %v218_v61, %v217_v60  ;;  %v220_v1 = vld [vmem:[%s858_s5 + $0x38] sm:$0xff]  ;;  %v221_v3 = vld [vmem:[%s858_s5 + $0x40] sm:$0xff]  ;;  %v223_v6 = vld [vmem:[%s858_s5 + $0x50] sm:$0xff] }
  0x10   :  { %526 = vmatpush3.bf16.msra.mxu0 %v525_v24  ;;  %v573_v2 = vpack.c.bf16 %v220_v1, %v219_v63  ;;  %v224_v7 = vld [vmem:[%s858_s5 + $0x58] sm:$0xff]  ;;  %v225_v9 = vld [vmem:[%s858_s5 + $0x60] sm:$0xff]  ;;  %v226_v10 = vld [vmem:[%s858_s5 + $0x68] sm:$0xff] }
  0x11   :  { %550 = vmatpush3.bf16.msra.mxu1 %v549_v25  ;;  %527 = vmatprep.subr.bf16.mxu0 %v590_v0  ;;  %v579_v8 = vpack.c.bf16 %v224_v7, %v223_v6  ;;  %v582_v11 = vpack.c.bf16 %v226_v10, %v225_v9  ;;  %v227_v12 = vld [vmem:[%s858_s5 + $0x70] sm:$0xff]  ;;  %v228_v13 = vld [vmem:[%s858_s5 + $0x78] sm:$0xff]  ;;  %v37_v15 = vld [vmem:[%s859_s2] sm:$0xff] }
  0x12   :  { %551 = vmatprep.subr.bf16.mxu1 %v590_v0  ;;  %v585_v14 = vpack.c.bf16 %v228_v13, %v227_v12  ;;  %v352_v24 = vld [vmem:[%s860_s6] ss:$0 sm:$0xff] }
  0x13   :  { %v318_v44 = vld [vmem:[%s854_s8] sm:$0x1] }
  0x14   :  { %529 = vmatpush3.bf16.msra.mxu0 %v528_v30  ;;  %v328_v47 = vld [vmem:[%s855_s9] sm:$0x1] }
  0x15   :  { %553 = vmatpush3.bf16.msra.mxu1 %v552_v31  ;;  %530 = vmatprep.subr.bf16.mxu0 %v590_v0 }
  0x16   :  { %554 = vmatprep.subr.bf16.mxu1 %v590_v0 }
  0x18   :  { %532 = vmatpush3.bf16.msra.mxu0 %v531_v36 }
  0x19   :  { %556 = vmatpush3.bf16.msra.mxu1 %v555_v37  ;;  %533 = vmatprep.subr.bf16.mxu0 %v590_v0 }
  0x1a   :  { %557 = vmatprep.subr.bf16.mxu1 %v590_v0 }
  0x1c   :  { %535 = vmatpush3.bf16.msra.mxu0 %v534_v42 }
  0x1d   :  { %559 = vmatpush3.bf16.msra.mxu1 %v558_v43  ;;  %536 = vmatprep.subr.bf16.mxu0 %v590_v0 }
  0x1e   :  { %560 = vmatprep.subr.bf16.mxu1 %v590_v0 }
  0x20   :  { %538 = vmatpush3.bf16.msra.mxu0 %v537_v48 }
  0x21   :  { %562 = vmatpush3.bf16.msra.mxu1 %v561_v51  ;;  %563 = vmatprep.subr.bf16.mxu0 %v590_v0 }
  0x23   :  { %443 = vmatmul.mubr.f32.vlgmr.msra.gmra.mrb[0].mxu0 %v39_v54 }
  0x24   :  { %478 = vmatmul.mubr.f32.vlgmr.msra.gmra.mrb[0].mxu1 %v126_v55  ;;  %565 = vmatpush3.bf16.msra.mxu0 %v564_v56 }
  0x25   :  { %566 = vmatprep.subr.bf16.mxu0 %v590_v0  ;;  %512 = vmatprep.mubr.msk.f32.mxu0 %vm592_vm0, %v591_v4  ;;  %v222_v4 = vld [vmem:[%s858_s5 + $0x48] sm:$0xff] }
  0x26   :  { %v576_v5 = vpack.c.bf16 %v222_v4, %v221_v3 }
  0x28   :  { %568 = vmatpush3.bf16.msra.mxu0 %v567_v59 }
  0x29   :  { %569 = vmatprep.subr.bf16.mxu0 %v590_v0 }
  0x2c   :  { %571 = vmatpush3.bf16.msra.mxu0 %v570_v62 }
  0x2d   :  { %572 = vmatprep.subr.bf16.mxu0 %v590_v0 }
  0x30   :  { %574 = vmatpush3.bf16.msra.mxu0 %v573_v2 }
  0x31   :  { %575 = vmatprep.subr.bf16.mxu0 %v590_v0 }
  0x34   :  { %577 = vmatpush3.bf16.msra.mxu0 %v576_v5 }
  0x35   :  { %578 = vmatprep.subr.bf16.mxu0 %v590_v0 }
  0x38   :  { %580 = vmatpush3.bf16.msra.mxu0 %v579_v8 }
  0x39   :  { %581 = vmatprep.subr.bf16.mxu0 %v590_v0 }
  0x3c   :  { %583 = vmatpush3.bf16.msra.mxu0 %v582_v11 }
  0x3d   :  { %584 = vmatprep.subr.bf16.mxu0 %v590_v0 }
  0x40   :  { %586 = vmatpush3.bf16.msra.mxu0 %v585_v14 }
  0x43   :  { %513 = vmatmul.mubr.f32.vlgmr.msra.gmra.mrb[2].mxu0 %v37_v15 }
  0xf6   :  { %v122_v16 = vpop.f32.mrb[0].mxu0 }
  0xf7   :  { %v444_v17 = vpop.f32.mrb[1].mxu0  ;;  %v209_v18 = vpop.f32.mrb[0].mxu1 }
  0xf8   :  { %v299_v19 = vadd.f32 %v209_v18, %v122_v16  ;;  %v309_v20 = vsub.f32 %v122_v16, %v209_v18  ;;  %v479_v21 = vpop.f32.mrb[1].mxu1 }
  0xfa   :  { %v300_v22 = vmul.f32 0.5, %v299_v19  ;;  %v310_v23 = vmul.f32 0.5, %v309_v20 }
 0x116   :  { %v295_v25 = vpop.f32.mrb[2].mxu0 }
 0x117   :  { %v301_v0 = vadd.f32 %v300_v22, %v295_v25  ;;  %v311_v26 = vsub.f32 %v310_v23, %v295_v25  ;;  %v514_v27 = vpop.f32.mrb[3].mxu0 }
 0x119   :  { %v308_v28 = vadd.f32 %v352_v24, %v301_v0  ;;  %v312_v29 = vadd.f32 %v352_v24, %v311_v26 }
 0x11b   :  { %v357_v30 = vpack.c.bf16 %v312_v29, %v308_v28  ;;  %v319_v31 = vadd.f32 %v312_v29, %v308_v28  ;;  %v329_v32 = vmul.f32 %v308_v28, %v308_v28  ;;  %v330_v33 = vmul.f32 %v312_v29, %v312_v29 }
 0x11d   :  { %358 = vst [vmem:[%s861_s7] sm:$0xff] %v357_v30   ;;  %v320_v34 = vrot.slane %v319_v31, 4  ;;  %v331_v35 = vadd.f32 %v330_v33, %v329_v32 }
 0x11f   :  { %v321_v36 = vadd.f32 %v320_v34, %v319_v31  ;;  %v332_v37 = vrot.slane %v331_v35, 4 }
 0x121   :  { %v322_v38 = vrot.slane %v321_v36, 2  ;;  %v333_v39 = vadd.f32 %v332_v37, %v331_v35 }
 0x123   :  { %v323_v40 = vadd.f32 %v322_v38, %v321_v36  ;;  %v334_v41 = vrot.slane %v333_v39, 2 }
 0x125   :  { %v324_v42 = vrot.slane %v323_v40, 1  ;;  %v335_v43 = vadd.f32 %v334_v41, %v333_v39 }
 0x127   :  { %v325_v45 = vadd.f32 %v324_v42, %v323_v40  ;;  %v336_v46 = vrot.slane %v335_v43, 1 }
 0x129   :  { %v326_v48 = vadd.f32 %v325_v45, %v318_v44  ;;  %v337_v49 = vadd.f32 %v336_v46, %v335_v43 }
 0x12b   :  { %327 = vst [vmem:[%s854_s8] sm:$0x1] %v326_v48  ;;  %v338_v50 = vadd.f32 %v337_v49, %v328_v47 }
 0x12d   :  { %339 = vst [vmem:[%s855_s9] sm:$0x1] %v338_v50 }

</bundles_post_ra>
